<compile_context>
chip_gen: v7x
topology: tpu7x:2x2x1
jax: 0.10.0
libtpu: 0.0.40
codegen_flags: <defaults>
</compile_context>

<pallas_src>
import jax
import jax.numpy as jnp
from jax import lax
from jax.experimental import pallas as pl
from jax.experimental.pallas import tpu as pltpu

MARGIN = 2.0          # ContrastiveBCELoss default margin
EPS = 1e-9            # ContrastiveLoss eps
REDUCTION = "sum"     # ContrastiveBCELoss default reduction
TILE_BYTES = 4 * 1024 * 1024   # per (tensor, pipeline buffer) budget
LANE = 128


def _bce_with_logits(p, t):
    # Numerically-stable BCEWithLogits: max(p,0) - p*t + log(1 + exp(-|p|))
    return jnp.maximum(p, 0.0) - p * t + jnp.log(1.0 + jnp.exp(-jnp.abs(p)))


def _pick_tile_b(b, d, itemsize, tile_b=None):
    """Batch tile from a ~4 MiB per-tensor-per-buffer budget; lane-multiple when tiled."""
    if tile_b is None:
        tile_b = TILE_BYTES // max(d * itemsize, 1)
    if tile_b >= b:
        return b, 1                                # single full-batch tile
    tile_b = max(LANE, (tile_b // LANE) * LANE)    # (4, tb) scalar block needs tb % 128 == 0
    if tile_b >= b:
        return b, 1
    return tile_b, pl.cdiv(b, tile_b)


def _make_kernel(tb, b_true, bpc, margin, eps, needs_mask):
    f32 = jnp.float32

    def kernel(o1_ref, o2_ref, sc_ref, out_ref):
        c = pl.program_id(0)        # "parallel" core axis (v7x megacore)
        i = pl.program_id(1)        # "arbitrary" batch-tile sweep

        @pl.when(i == 0)
        def _():
            out_ref[...] = jnp.zeros_like(out_ref)

        # Embedding tiles stream in their native dtype; upcast in VMEM for the math.
        o1 = o1_ref[...].astype(f32)                               # (tb, d)
        o2 = o2_ref[...].astype(f32)                               # (tb, d)
        sc = sc_ref[...]                                           # (4, tb) f32

        p = sc[0:2, :]                                             # (2, tb) pred1/pred2
        t = sc[2:4, :]                                             # (2, tb) target1/target2

        # --- BCEWithLogits, both heads at once, lane-dense ---
        bce2 = _bce_with_logits(p, t)                              # (2, tb)
        bce = bce2[0:1, :] + bce2[1:2, :]                          # (1, tb)

        # --- Contrastive: per-row squared distance, relayouted once to lane-dense ---
        diff = o2 - o1
        dist = jnp.sum(diff * diff, axis=1, keepdims=True).reshape(1, tb)   # (1, tb)
        tgt = (t[0:1, :] == t[1:2, :]).astype(f32)                 # (1, tb)
        hinge = jnp.maximum(margin - jnp.sqrt(dist + eps), 0.0)
        con = 0.5 * (tgt * dist + (1.0 - tgt) * hinge * hinge)     # (1, tb)

        per_row = bce + con                                        # (1, tb)
        if needs_mask:
            g = c * bpc + i                                        # global tile index (unclamped)
            rows = g * tb + lax.broadcasted_iota(jnp.int32, (1, tb), 1)
            per_row = jnp.where(rows < b_true, per_row, 0.0)

        # Lane-dense per-core partial accumulator (resident output block across i).
        out_ref[...] += per_row.reshape(1, 1, tb)

    return kernel


def contrastive_bce_loss(output1, output2, pred1, pred2, target1, target2,
                         margin=MARGIN, reduction=REDUCTION, tile_b=None, num_cores=2):
    assert reduction in ("sum", "mean")
    b, d = output1.shape
    f32 = jnp.float32

    # Pack the four per-sample scalars TRANSPOSED -> (4, B): one tiny DMA, and each
    # row is lane-dense (1, TB) inside the kernel (pads only 4->8 sublanes in VMEM).
    scalars = jnp.stack(
        [pred1.reshape(b), pred2.reshape(b), target1.reshape(b), target2.reshape(b)],
        axis=0).astype(f32)

    itemsize = jnp.dtype(output1.dtype).itemsize
    tb, nb = _pick_tile_b(b, d, itemsize, tile_b)
    nc = max(1, min(num_cores, nb))       # leading "parallel" axis (2 TCs on v7x)
    bpc = pl.cdiv(nb, nc)                 # batch tiles per core
    needs_mask = (nc * bpc * tb != b)     # ragged tail and/or duplicate tail slot

    kernel = _make_kernel(tb, b, bpc, float(margin), float(EPS), needs_mask)

    def tile_map(c, i):                   # clamp duplicate tail slots back in-bounds
        return (jnp.minimum(c * bpc + i, nb - 1), 0)

    def scalar_map(c, i):
        return (0, jnp.minimum(c * bpc + i, nb - 1))

    cost = pl.CostEstimate(
        flops=int(3 * b * d + 30 * b),
        transcendentals=int(5 * b),                        # 2x exp, 2x log, 1x sqrt / row
        bytes_accessed=int(2 * b * d * itemsize + 4 * b * 4 + nc * tb * 4),
    )

    partial = pl.pallas_call(
        kernel,
        out_shape=jax.ShapeDtypeStruct((nc, 1, tb), f32),
        grid_spec=pltpu.PrefetchScalarGridSpec(
            num_scalar_prefetch=0,
            grid=(nc, bpc),
            in_specs=[
                pl.BlockSpec((tb, d), tile_map),       # output1 tile (native dtype)
                pl.BlockSpec((tb, d), tile_map),       # output2 tile (native dtype)
                pl.BlockSpec((4, tb), scalar_map),     # packed [p1; p2; t1; t2] columns
            ],
            out_specs=pl.BlockSpec((1, 1, tb), lambda c, i: (c, 0, 0)),
        ),
        compiler_params=pltpu.CompilerParams(
            dimension_semantics=("parallel", "arbitrary"),
            vmem_limit_bytes=48 * 1024 * 1024,
        ),
        cost_estimate=cost,
    )(output1, output2, scalars)

    # Each BCE mean divides by B and the contrastive mean divides by B -> one sum / B.
    scale = (1.0 / float(b)) * (0.5 if reduction == "mean" else 1.0)
    return jnp.sum(partial) * scale


def reference_loss(output1, output2, pred1, pred2, target1, target2,
                   margin=MARGIN, reduction=REDUCTION):
    pred1 = pred1.reshape(-1)
    pred2 = pred2.reshape(-1)
    target1 = target1.reshape(-1)
    target2 = target2.reshape(-1)
    bce = (jnp.mean(_bce_with_logits(pred1, target1))
           + jnp.mean(_bce_with_logits(pred2, target2)))
    tgt = (target1 == target2).astype(jnp.float32)
    dist = jnp.sum((output2 - output1) ** 2, axis=1)
    hinge = jnp.maximum(margin - jnp.sqrt(dist + EPS), 0.0)
    con = jnp.mean(0.5 * (tgt * dist + (1.0 - tgt) * hinge ** 2))
    total = bce + con
    return total if reduction == "sum" else total / 2.0


def _run_case(key, b, d, tile_b=None, dtype=jnp.float32):
    k1, k2, k3, k4, k5, k6 = jax.random.split(key, 6)
    output1 = jax.random.normal(k1, (b, d), dtype=jnp.float32).astype(dtype)
    output2 = jax.random.normal(k2, (b, d), dtype=jnp.float32).astype(dtype)
    pred1 = jax.random.normal(k3, (b, 1), dtype=jnp.float32)
    pred2 = jax.random.normal(k4, (b, 1), dtype=jnp.float32)
    target1 = jax.random.bernoulli(k5, 0.5, (b, 1)).astype(jnp.float32)
    target2 = jax.random.bernoulli(k6, 0.5, (b, 1)).astype(jnp.float32)

    loss = contrastive_bce_loss(output1, output2, pred1, pred2, target1, target2,
                                tile_b=tile_b)
    jax.block_until_ready(loss)
    ref = reference_loss(output1.astype(jnp.float32), output2.astype(jnp.float32),
                         pred1, pred2, target1, target2)
    assert jnp.allclose(loss, ref, rtol=1e-5, atol=1e-5), (b, d, tile_b, loss, ref)


if __name__ == "__main__":
    root = jax.random.PRNGKey(0)
    ka, kb, kc, kd, ke = jax.random.split(root, 5)

    # Small shape consistent with the module (single full-batch tile).
    _run_case(ka, b=8, d=32)
    # Odd shapes, single tile (block == full array, no (8,128) padding issues).
    _run_case(kb, b=6, d=40)
    # Multi-tile: 3 batch tiles over 2 "cores" -> exercises clamp of the duplicate
    # tail slot + row masking + per-core partial accumulation.
    _run_case(kc, b=384, d=32, tile_b=128)
    # Ragged last block (B % TB != 0) without padding the big tensors.
    _run_case(kd, b=300, d=48, tile_b=128)
    # Native bf16 streaming with in-kernel f32 upcast; exact two-tile split.
    _run_case(ke, b=256, d=64, tile_b=128, dtype=jnp.bfloat16)

    print("KERNEL_OK")
</pallas_src>

<mosaic_0001>
module attributes {stable_mosaic.version = 11 : i64} {
  func.func @kernel(%arg0: i32, %arg1: i32, %arg2: memref<8x32xf32, #tpu.memory_space<vmem>>, %arg3: memref<8x32xf32, #tpu.memory_space<vmem>>, %arg4: memref<4x8xf32, #tpu.memory_space<vmem>>, %arg5: memref<1x1x8xf32, #tpu.memory_space<vmem>>) attributes {dimension_semantics = [#tpu.dimension_semantics<parallel>, #tpu.dimension_semantics<arbitrary>], iteration_bounds = array<i64: 1, 1>, scalar_prefetch = 0 : i64, scratch_operands = 0 : i64, tpu.core_type = #tpu.core_type<tc>, window_params = [{transform_indices = @transform_0, window_bounds = array<i64: 8, 32>}, {transform_indices = @transform_1, window_bounds = array<i64: 8, 32>}, {transform_indices = @transform_2, window_bounds = array<i64: 4, 8>}, {transform_indices = @transform_3, window_bounds = array<i64: 1, 1, 8>}]} {
    %c0_i32 = arith.constant 0 : i32
    %0 = arith.cmpi eq, %arg1, %c0_i32 : i32
    %1 = arith.extui %0 : i1 to i32
    %c0_i32_0 = arith.constant 0 : i32
    %2 = arith.cmpi ne, %1, %c0_i32_0 : i32
    scf.if %2 {
      %cst_20 = arith.constant 0.000000e+00 : f32
      %53 = vector.broadcast %cst_20 : f32 to vector<1x1x8xf32>
      %c0_21 = arith.constant 0 : index
      %c0_22 = arith.constant 0 : index
      %c0_23 = arith.constant 0 : index
      %54 = vector.load %arg5[%c0_21, %c0_22, %c0_23] : memref<1x1x8xf32, #tpu.memory_space<vmem>>, vector<1x1x8xf32>
      tpu.vector_store %arg5[%c0_21, %c0_22, %c0_23], %53 {strides = array<i32>} : memref<1x1x8xf32, #tpu.memory_space<vmem>>, vector<1x1x8xf32>,
    } else {
    }
    %c0 = arith.constant 0 : index
    %c0_1 = arith.constant 0 : index
    %3 = vector.load %arg2[%c0, %c0_1] : memref<8x32xf32, #tpu.memory_space<vmem>>, vector<8x32xf32>
    %c0_2 = arith.constant 0 : index
    %c0_3 = arith.constant 0 : index
    %4 = vector.load %arg3[%c0_2, %c0_3] : memref<8x32xf32, #tpu.memory_space<vmem>>, vector<8x32xf32>
    %c0_4 = arith.constant 0 : index
    %c0_5 = arith.constant 0 : index
    %5 = vector.load %arg4[%c0_4, %c0_5] : memref<4x8xf32, #tpu.memory_space<vmem>>, vector<4x8xf32>
    %6 = vector.extract_strided_slice %5 {offsets = [0, 0], sizes = [2, 8], strides = [1, 1]} : vector<4x8xf32> to vector<2x8xf32>
    %7 = vector.extract_strided_slice %5 {offsets = [2, 0], sizes = [2, 8], strides = [1, 1]} : vector<4x8xf32> to vector<2x8xf32>
    %cst = arith.constant 0.000000e+00 : f32
    %8 = vector.broadcast %cst : f32 to vector<2x8xf32>
    %9 = arith.maximumf %6, %8 : vector<2x8xf32>
    %10 = arith.mulf %6, %7 : vector<2x8xf32>
    %11 = arith.subf %9, %10 : vector<2x8xf32>
    %12 = math.absf %6 : vector<2x8xf32>
    %cst_6 = arith.constant 0.000000e+00 : f32
    %13 = vector.broadcast %cst_6 : f32 to vector<2x8xf32>
    %14 = arith.subf %13, %12 : vector<2x8xf32>
    %15 = math.exp %14 : vector<2x8xf32>
    %cst_7 = arith.constant 1.000000e+00 : f32
    %16 = vector.broadcast %cst_7 : f32 to vector<2x8xf32>
    %17 = arith.addf %16, %15 : vector<2x8xf32>
    %18 = math.log %17 : vector<2x8xf32>
    %19 = arith.addf %11, %18 : vector<2x8xf32>
    %20 = vector.extract_strided_slice %19 {offsets = [0, 0], sizes = [1, 8], strides = [1, 1]} : vector<2x8xf32> to vector<1x8xf32>
    %21 = vector.extract_strided_slice %19 {offsets = [1, 0], sizes = [1, 8], strides = [1, 1]} : vector<2x8xf32> to vector<1x8xf32>
    %22 = arith.addf %20, %21 : vector<1x8xf32>
    %23 = arith.subf %4, %3 : vector<8x32xf32>
    %24 = arith.mulf %23, %23 : vector<8x32xf32>
    %cst_8 = arith.constant dense<0.000000e+00> : vector<8xf32>
    %25 = vector.multi_reduction <add>, %24, %cst_8 [1] : vector<8x32xf32> to vector<8xf32>
    %26 = vector.shape_cast %25 : vector<8xf32> to vector<8x1xf32>
    %27 = vector.shape_cast %26 : vector<8x1xf32> to vector<1x8xf32>
    %28 = vector.extract_strided_slice %7 {offsets = [0, 0], sizes = [1, 8], strides = [1, 1]} : vector<2x8xf32> to vector<1x8xf32>
    %29 = vector.extract_strided_slice %7 {offsets = [1, 0], sizes = [1, 8], strides = [1, 1]} : vector<2x8xf32> to vector<1x8xf32>
    %30 = arith.cmpf oeq, %28, %29 : vector<1x8xf32>
    %31 = arith.extui %30 : vector<1x8xi1> to vector<1x8xi32>
    %32 = arith.sitofp %31 : vector<1x8xi32> to vector<1x8xf32>
    %cst_9 = arith.constant 9.99999971E-10 : f32
    %33 = vector.broadcast %cst_9 : f32 to vector<1x8xf32>
    %34 = arith.addf %27, %33 : vector<1x8xf32>
    %35 = math.sqrt %34 : vector<1x8xf32>
    %cst_10 = arith.constant 2.000000e+00 : f32
    %36 = vector.broadcast %cst_10 : f32 to vector<1x8xf32>
    %37 = arith.subf %36, %35 : vector<1x8xf32>
    %cst_11 = arith.constant 0.000000e+00 : f32
    %38 = vector.broadcast %cst_11 : f32 to vector<1x8xf32>
    %39 = arith.maximumf %37, %38 : vector<1x8xf32>
    %40 = arith.mulf %32, %27 : vector<1x8xf32>
    %cst_12 = arith.constant 1.000000e+00 : f32
    %41 = vector.broadcast %cst_12 : f32 to vector<1x8xf32>
    %42 = arith.subf %41, %32 : vector<1x8xf32>
    %43 = arith.mulf %42, %39 : vector<1x8xf32>
    %44 = arith.mulf %43, %39 : vector<1x8xf32>
    %45 = arith.addf %40, %44 : vector<1x8xf32>
    %cst_13 = arith.constant 5.000000e-01 : f32
    %46 = vector.broadcast %cst_13 : f32 to vector<1x8xf32>
    %47 = arith.mulf %46, %45 : vector<1x8xf32>
    %48 = arith.addf %22, %47 : vector<1x8xf32>
    %c0_14 = arith.constant 0 : index
    %c0_15 = arith.constant 0 : index
    %c0_16 = arith.constant 0 : index
    %49 = vector.load %arg5[%c0_14, %c0_15, %c0_16] : memref<1x1x8xf32, #tpu.memory_space<vmem>>, vector<1x1x8xf32>
    %50 = vector.shape_cast %48 : vector<1x8xf32> to vector<1x1x8xf32>
    %51 = arith.addf %49, %50 : vector<1x1x8xf32>
    %c0_17 = arith.constant 0 : index
    %c0_18 = arith.constant 0 : index
    %c0_19 = arith.constant 0 : index
    %52 = vector.load %arg5[%c0_17, %c0_18, %c0_19] : memref<1x1x8xf32, #tpu.memory_space<vmem>>, vector<1x1x8xf32>
    tpu.vector_store %arg5[%c0_17, %c0_18, %c0_19], %51 {strides = array<i32>} : memref<1x1x8xf32, #tpu.memory_space<vmem>>, vector<1x1x8xf32>,
    return
  }
  func.func @transform_0(%arg0: i32, %arg1: i32) -> (i32, i32) {
    %c1_i32 = arith.constant 1 : i32
    %0 = arith.muli %arg0, %c1_i32 : i32
    %1 = arith.addi %0, %arg1 : i32
    %c0_i32 = arith.constant 0 : i32
    %2 = arith.minsi %1, %c0_i32 : i32
    %c0_i32_0 = arith.constant 0 : i32
    %c0_i32_1 = arith.constant 0 : i32
    return %2, %c0_i32_0 : i32, i32
  }
  func.func @transform_1(%arg0: i32, %arg1: i32) -> (i32, i32) {
    %c1_i32 = arith.constant 1 : i32
    %0 = arith.muli %arg0, %c1_i32 : i32
    %1 = arith.addi %0, %arg1 : i32
    %c0_i32 = arith.constant 0 : i32
    %2 = arith.minsi %1, %c0_i32 : i32
    %c0_i32_0 = arith.constant 0 : i32
    %c0_i32_1 = arith.constant 0 : i32
    return %2, %c0_i32_0 : i32, i32
  }
  func.func @transform_2(%arg0: i32, %arg1: i32) -> (i32, i32) {
    %c1_i32 = arith.constant 1 : i32
    %0 = arith.muli %arg0, %c1_i32 : i32
    %1 = arith.addi %0, %arg1 : i32
    %c0_i32 = arith.constant 0 : i32
    %2 = arith.minsi %1, %c0_i32 : i32
    %c0_i32_0 = arith.constant 0 : i32
    %c0_i32_1 = arith.constant 0 : i32
    return %c0_i32_0, %2 : i32, i32
  }
  func.func @transform_3(%arg0: i32, %arg1: i32) -> (i32, i32, i32) {
    %c0_i32 = arith.constant 0 : i32
    %c0_i32_0 = arith.constant 0 : i32
    %c0_i32_1 = arith.constant 0 : i32
    return %arg0, %c0_i32, %c0_i32_0 : i32, i32, i32
  }
}

</mosaic_0001>

<bundles_post_ra>
// kernel: tpu_custom_call.1
= control target key start
LH: loop header
LB: loop body
LE: loop exit
PB: predicated region body
PF: predicated region fallthrough
CT: control target
= control target key end

     0   :  { %8 = vsyncpa [#allocation3], 0  ;;  %s332_s0 = inlined_call_operand.hbm [shape: f32[8,32], index: 0, kind: input, shape index: {}]   ;;  %s333_s1 = inlined_call_operand.hbm [shape: f32[8,32], index: 1, kind: input, shape index: {}]   ;;  %s334_s2 = inlined_call_operand.vmem [shape: f32[4,8], index: 2, kind: input, shape index: {}]   ;;  %s335_s3 = inlined_call_operand.hbm [shape: f32[1,1,8], index: 3, kind: output, shape index: {}]  }
   0x1   :  { %9 = vsyncpa [#allocation6], 0 }
   0x2   :  { %10 = vsyncpa [#allocation4], 0  ;;  %s267_s12 = smov [#allocation2]   ;;  %s268_s14 = smov [#allocation5]  }
   0x3   :  { %s22_s13 = sshll.u32 %s267_s12, 4  ;;  %s37_s15 = sshll.u32 %s268_s14, 4  ;;  %s23_s13 = int_to_ptr.vmem [resolvable:$true] %s22_s13  ;;  %s38_s15 = int_to_ptr.vmem [resolvable:$true] %s37_s15 }
   0x4   :  { %s195_s18 = scalar_lea.hbm %s332_s0, 128 }
   0x5   :  { %p196_p0 = scmp.ne.s32.totalorder %s332_s0, %s195_s18  ;;  %p199_p1 = scmp.lt.u32.totalorder %s195_s18, %s332_s0 }
   0x7   :  { %p201_p2 = pnand %p199_p1, %p196_p0 }
   0x9   :  { %204 = shalt.err (!%p201_p2)
}
   0xa   :  { %s205_s23 = scalar_lea.vmem %s23_s13, 128  ;;  %p210_p4 = scmp.lt.s32.totalorder %s23_s13, %s23_s13 }
   0xb   :  { %p206_p3 = scmp.ne.s32.totalorder %s23_s13, %s205_s23  ;;  %p211_p5 = scmp.lt.s32.totalorder %s205_s23, %s205_s23 }
   0xd   :  { %p212_p6 = por %p211_p5, %p210_p4 }
   0xf   :  { %p213_p7 = pnand %p212_p6, %p206_p3 }
  0x11   :  { %216 = shalt.err (!%p213_p7)
}
  0x12   :  { %25 = dma.hbm_to_vmem [thread:$0]  %s332_s0, 128, %s23_s13, [#allocation3]  }
  0x13   :  { %s217_s28 = scalar_lea.hbm %s333_s1, 128 }
  0x14   :  { %p218_p8 = scmp.ne.s32.totalorder %s333_s1, %s217_s28  ;;  %p221_p9 = scmp.lt.u32.totalorder %s217_s28, %s333_s1 }
  0x16   :  { %p223_p10 = pnand %p221_p9, %p218_p8 }
  0x18   :  { %226 = shalt.err (!%p223_p10)
}
  0x19   :  { %s227_s6 = scalar_lea.vmem %s38_s15, 128  ;;  %p232_p12 = scmp.lt.s32.totalorder %s38_s15, %s38_s15 }
  0x1a   :  { %p228_p11 = scmp.ne.s32.totalorder %s38_s15, %s227_s6  ;;  %p233_p13 = scmp.lt.s32.totalorder %s227_s6, %s227_s6 }
  0x1c   :  { %p234_p0 = por %p233_p13, %p232_p12 }
  0x1e   :  { %p235_p1 = pnand %p234_p0, %p228_p11 }
  0x20   :  { %238 = shalt.err (!%p235_p1)
}
  0x21   :  { %40 = dma.hbm_to_vmem [thread:$0]  %s333_s1, 128, %s38_s15, [#allocation6]  }
  0x22   :  { %261 = dma.done.wait [#allocation3], 128  }
  0x23   :  { %262 = vsyncadd [#allocation3], 4294967168 }
  0x24   :  { %263 = dma.done.wait [#allocation6], 128  }
  0x25   :  { %264 = vsyncadd [#allocation6], 4294967168  ;;  %vm86_vm0 = vcmask 57344   ;;  %v269_v0 = vmov 0.0   ;;  %v88_v1 = vld [vmem:[#allocation2] sm:$0xff]  ;;  %v89_v2 = vld [vmem:[#allocation5] sm:$0xff]  ;;  %v131_v15 = vlaneseq }
  0x26   :  { %87 = vst.msk [vmem:[#allocation7] sm:$0x1] %vm86_vm0, %v269_v0  ;;  %v109_v3 = vsub.f32 %v89_v2, %v88_v1  ;;  %vm111_vm1 = vcmask 261120   ;;  %v90_v6 = vld [vmem:[%s334_s2] sm:$0xf]  ;;  %s270_s1 = smov [#allocation7]  }
  0x27   :  { %v97_v7 = vand.u32 2147483647, %v90_v6  ;;  %v93_v14 = vrot.slane %v90_v6, 2  ;;  %v115_v16 = vrot.slane %v90_v6, 1  ;;  %v91_v18 = vmax.f32 %v90_v6, 0.0  ;;  %s164_s2 = sshll.u32 %s270_s1, 4  ;;  %s165_s2 = int_to_ptr.vmem [resolvable:$true] %s164_s2 }
  0x28   :  { %v110_v4 = vmul.f32 %v109_v3, %v109_v3  ;;  %v132_v21 = vand.u32 127, %v131_v15  ;;  %v134_v22 = vshrl.u32 %v131_v15, 7  ;;  %s239_s10 = scalar_lea.vmem %s165_s2, 16  ;;  %s243_s11 = scalar_lea.vmem %s165_s2, 32 }
  0x29   :  { %v98_v8 = vsub.f32 0.0, %v97_v7  ;;  %v95_v19 = vmul.f32 %v93_v14, %v90_v6  ;;  %vm117_vm3 = vcmp.eq.f32.partialorder %v90_v6, %v115_v16  ;;  %p240_p2 = scmp.ne.s32.totalorder %s165_s2, %s239_s10  ;;  %p244_p3 = scmp.lt.s32.totalorder %s165_s2, %s165_s2 }
  0x2a   :  { %v112_v5 = vsel %vm111_vm1, %v110_v4, 0.0  ;;  %v135_v30 = vsub.s32 %v132_v21, %v134_v22  ;;  %v184_v31 = vsel %vm117_vm3, 1.0, %v269_v0  ;;  %p245_p4 = scmp.lt.s32.totalorder %s243_s11, %s239_s10 }
  0x2b   :  { %113 = vadd.xlane.f32.xlu0 %v112_v5  ;;  %v99_v9 = vmul.f32 1.442695, %v98_v8  ;;  %v96_v27 = vsub.f32 %v91_v18, %v95_v19  ;;  %v139_v33 = vsub.f32 1.0, %v184_v31 }
  0x2c   :  { %p246_p5 = por %p245_p4, %p244_p3 }
  0x2d   :  { %189 = vpow2.f32 %v99_v9  ;;  %v154_v45 = vld [vmem:[#allocation7] sm:$0x1] }
  0x2e   :  { %p247_p6 = pnand %p246_p5, %p240_p2 }
  0x37   :  { %v190_v10 = vpop.eup %189 }
  0x38   :  { %v101_v12 = vadd.f32 1.0, %v190_v10 }
  0xb8   :  { %v114_v11 = vpop.xlane.xlu0 %113 }
  0xb9   :  { %v120_v13 = vadd.f32 1e-09, %v114_v11  ;;  %v136_v35 = vrot.slane %v114_v11, %v135_v30 }
  0xbb   :  { %191 = vrsqrt.f32 %v120_v13  ;;  %vm123_vm2 = vcmp.eq.f32.partialorder %v120_v13, inf  ;;  %v126_v24 = vand.u32 2147483648, %v120_v13  ;;  %vm125_vm4 = vcmp.eq.f32.partialorder %v120_v13, 0.0 }
  0xbc   :  { %193 = vlog2.f32 %v101_v12  ;;  %v138_v39 = vmul.f32 %v184_v31, %v136_v35 }
  0xc5   :  { %v192_v17 = vpop.eup %191 }
  0xc6   :  { %v122_v20 = vmul.f32 %v192_v17, %v120_v13  ;;  %v194_v23 = vpop.eup %193 }
  0xc7   :  { %v103_v28 = vmul.f32 0.6931472, %v194_v23 }
  0xc8   :  { %v124_v25 = vsel %vm123_vm2, %v120_v13, %v122_v20 }
  0xc9   :  { %v127_v26 = vsel %vm125_vm4, %v126_v24, %v124_v25  ;;  %v104_v34 = vadd.f32 %v103_v28, %v96_v27 }
  0xca   :  { %v128_v29 = vsub.f32 2.0, %v127_v26 }
  0xcb   :  { %v106_v38 = vrot.slane %v104_v34, 1 }
  0xcc   :  { %v129_v32 = vmax.f32 %v128_v29, 0.0 }
  0xcd   :  { %v108_v42 = vadd.f32 %v106_v38, %v104_v34 }
  0xce   :  { %v144_v36 = vrot.slane %v129_v32, %v135_v30 }
  0xd0   :  { %v146_v37 = vmul.f32 %v144_v36, %v139_v33 }
  0xd2   :  { %v147_v40 = vmul.f32 %v146_v37, %v144_v36 }
  0xd4   :  { %v148_v41 = vadd.f32 %v147_v40, %v138_v39 }
  0xd6   :  { %v149_v43 = vmul.f32 0.5, %v148_v41 }
  0xd8   :  { %v151_v44 = vrot.slane %v149_v43, 2 }
  0xda   :  { %v153_v46 = vadd.f32 %v151_v44, %v108_v42 }
  0xdc   :  { %v155_v47 = vadd.f32 %v154_v45, %v153_v46 }
  0xde   :  { %157 = vst.msk [vmem:[#allocation7] sm:$0x1] %vm86_vm0, %v155_v47 }
  0xdf   :  { %250 = shalt.err (!%p247_p6)
}
  0xe0   :  { %s251_s14 = scalar_lea.hbm %s335_s3, 16 }
  0xe1   :  { %p252_p7 = scmp.ne.s32.totalorder %s335_s3, %s251_s14  ;;  %p255_p8 = scmp.lt.u32.totalorder %s251_s14, %s335_s3 }
  0xe3   :  { %p257_p9 = pnand %p255_p8, %p252_p7 }
  0xe5   :  { %260 = shalt.err (!%p257_p9)
}
  0xe6   :  { %167 = dma.vmem_to_hbm [thread:$0]  %s165_s2, 16, %s335_s3, [#allocation4]  }
  0xe7   :  { %265 = dma.done.wait [#allocation4], 16  }
  0xe8   :  { %266 = vsyncadd [#allocation4], 4294967280 }
  0xe9   :  { %171 = vsyncpa [#allocation3], 1 }
  0xea   :  { %172 = vsyncpa [#allocation6], 1 }
  0xeb   :  { %173 = vsyncpa [#allocation4], 1 }

</bundles_post_ra>
